<compile_context>
chip_gen: v7x
topology: tpu7x:2x2x1
jax: 0.10.0
libtpu: 0.0.40
codegen_flags: <defaults>
</compile_context>

<pallas_src>
import functools
import math

import jax
import jax.numpy as jnp
from jax.experimental import pallas as pl
from jax.experimental.pallas import tpu as pltpu


def _qkv_proj_kernel(q_ref, k_ref, v_ref,
                     wq_ref, bq_ref, wk_ref, bk_ref, wv_ref, bv_ref,
                     qp_ref, kp_ref, vp_ref, *, compute_dtype):
    """Fused Q/K/V projections on a (tm, D) row tile. Weights are (D_in, D_out)."""
    cd = compute_dtype

    def proj(x_ref, w_ref, b_ref):
        y = jnp.dot(x_ref[...].astype(cd), w_ref[...].astype(cd),
                    preferred_element_type=jnp.float32)
        return y + b_ref[...]          # bias broadcast done once per projection

    qp_ref[...] = proj(q_ref, wq_ref, bq_ref).astype(qp_ref.dtype)
    kp_ref[...] = proj(k_ref, wk_ref, bk_ref).astype(kp_ref.dtype)
    vp_ref[...] = proj(v_ref, wv_ref, bv_ref).astype(vp_ref.dtype)


def _attn_out_kernel(q_ref, k_ref, v_ref, wo_ref, bo_ref, out_ref,
                     *, num_heads, compute_dtype):
    """Batched-over-heads attention + fused output projection.

    q_ref: (1, H, tq, dk)   (1/sqrt(dk) already folded into the Q projection)
    k_ref, v_ref: (1, H, S, dk)
    wo_ref: (H, dk, D)  -- head-reshaped W_o^T
    out_ref: (1, tq, D)
    """
    cd = compute_dtype
    q = q_ref[0].astype(cd)            # (H, tq, dk)
    k = k_ref[0].astype(cd)            # (H, S,  dk)
    v = v_ref[0].astype(cd)            # (H, S,  dk)

    # Scores for all heads in one batched MXU contraction: (H, tq, S).
    s = jnp.einsum("hqd,hkd->hqk", q, k, preferred_element_type=jnp.float32)

    # Open-coded, numerically stable softmax; the divide goes to the EUP.
    m = jnp.max(s, axis=-1, keepdims=True)
    e = jnp.exp(s - m)
    p = e * pl.reciprocal(jnp.sum(e, axis=-1, keepdims=True), approx=True)

    # Context for all heads: (H, tq, dk).
    ctx = jnp.einsum("hqk,hkd->hqd", p.astype(cd), v,
                     preferred_element_type=jnp.float32)

    # Fused output projection: head-merge == sum over heads of (tq,dk)@(dk,D).
    # No lane-axis concatenate; accumulator and store are lane-dense (tq, D).
    acc = jnp.dot(ctx[0].astype(cd), wo_ref[0].astype(cd),
                  preferred_element_type=jnp.float32)
    for h in range(1, num_heads):      # static, small unrolled loop over heads
        acc = acc + jnp.dot(ctx[h].astype(cd), wo_ref[h].astype(cd),
                            preferred_element_type=jnp.float32)
    out_ref[0] = (acc + bo_ref[...]).astype(out_ref.dtype)


@functools.partial(jax.jit, static_argnames=("num_heads", "compute_dtype"))
def multi_head_attention(q, k, v, params, *, num_heads,
                         compute_dtype=jnp.float32):
    """q, k, v: (B, S, D).  params: PyTorch-style Linear weights/biases.

    compute_dtype=jnp.bfloat16 enables bf16 MXU operands with f32 accumulation
    (v6e/v7x win); default keeps full f32 to match the reference tightly.
    """
    B, S, D = q.shape
    assert D % num_heads == 0
    d_k = D // num_heads
    R = B * S
    scale = 1.0 / math.sqrt(d_k)

    # Pre-transposed (in, out) weights; 1/sqrt(d_k) folded into W_q / b_q.
    wq_t = params["wq"].T * scale
    bq = params["bq"].reshape(1, D) * scale
    wk_t = params["wk"].T
    bk = params["bk"].reshape(1, D)
    wv_t = params["wv"].T
    bv = params["bv"].reshape(1, D)
    wo_r = params["wo"].T.reshape(num_heads, d_k, D)   # head-major rows of W_o^T
    bo = params["bo"].reshape(1, D)

    qf = q.reshape(R, D)
    kf = k.reshape(R, D)
    vf = v.reshape(R, D)

    # ---- Stage 1: fused QKV projection over all B*S rows -------------------
    tm = R if R <= 256 else 256        # full-dim block or multiple of 8
    row_spec = pl.BlockSpec((tm, D), lambda i: (i, 0))
    w_spec = pl.BlockSpec((D, D), lambda i: (0, 0))
    b_spec = pl.BlockSpec((1, D), lambda i: (0, 0))

    qp, kp, vp = pl.pallas_call(
        functools.partial(_qkv_proj_kernel, compute_dtype=compute_dtype),
        out_shape=(jax.ShapeDtypeStruct((R, D), q.dtype),) * 3,
        grid_spec=pltpu.PrefetchScalarGridSpec(
            num_scalar_prefetch=0,
            grid=(pl.cdiv(R, tm),),
            in_specs=[row_spec, row_spec, row_spec,
                      w_spec, b_spec, w_spec, b_spec, w_spec, b_spec],
            out_specs=[row_spec, row_spec, row_spec],
        ),
        compiler_params=pltpu.CompilerParams(
            dimension_semantics=("parallel",)),
    )(qf, kf, vf, wq_t, bq, wk_t, bk, wv_t, bv)

    # Head-major layout (B, H, S, d_k), done with plain XLA in the wrapper so
    # the in-kernel contractions are canonical head-leading batched matmuls.
    def to_heads(x):
        return x.reshape(B, S, num_heads, d_k).transpose(0, 2, 1, 3)

    qh, kh, vh = to_heads(qp), to_heads(kp), to_heads(vp)

    # ---- Stage 2: attention + output projection -----------------------------
    tq = S if S <= 512 else 256        # query tile; caps (H, tq, S) scores
    q_spec = pl.BlockSpec((1, num_heads, tq, d_k), lambda b, i: (b, 0, i, 0))
    kv_spec = pl.BlockSpec((1, num_heads, S, d_k), lambda b, i: (b, 0, 0, 0))
    wo_spec = pl.BlockSpec((num_heads, d_k, D), lambda b, i: (0, 0, 0))
    bo_spec = pl.BlockSpec((1, D), lambda b, i: (0, 0))
    out_spec = pl.BlockSpec((1, tq, D), lambda b, i: (b, i, 0))

    out = pl.pallas_call(
        functools.partial(_attn_out_kernel, num_heads=num_heads,
                          compute_dtype=compute_dtype),
        out_shape=jax.ShapeDtypeStruct((B, S, D), q.dtype),
        grid_spec=pltpu.PrefetchScalarGridSpec(
            num_scalar_prefetch=0,
            grid=(B, pl.cdiv(S, tq)),
            in_specs=[q_spec, kv_spec, kv_spec, wo_spec, bo_spec],
            out_specs=out_spec,
        ),
        compiler_params=pltpu.CompilerParams(
            dimension_semantics=("parallel", "parallel")),
    )(qh, kh, vh, wo_r, bo)
    return out


def _reference(q, k, v, params, *, num_heads):
    """Pure-JAX reference matching the PyTorch forward (eval mode, mask=None)."""
    B, S, D = q.shape
    d_k = D // num_heads

    def lin(x, w, b):
        return x @ w.T + b

    qp = lin(q, params["wq"], params["bq"]).reshape(B, S, num_heads, d_k).transpose(0, 2, 1, 3)
    kp = lin(k, params["wk"], params["bk"]).reshape(B, S, num_heads, d_k).transpose(0, 2, 1, 3)
    vp = lin(v, params["wv"], params["bv"]).reshape(B, S, num_heads, d_k).transpose(0, 2, 1, 3)

    scores = jnp.einsum("bhqd,bhkd->bhqk", qp, kp) / math.sqrt(d_k)
    probs = jax.nn.softmax(scores, axis=-1)
    x = jnp.einsum("bhqk,bhkd->bhqd", probs, vp)
    x = x.transpose(0, 2, 1, 3).reshape(B, S, D)
    return lin(x, params["wo"], params["bo"])


if __name__ == "__main__":
    B, S, D, H = 2, 8, 32, 4  # batch, seq, d_model, heads
    dropout = 0.1             # unused in eval mode

    key = jax.random.PRNGKey(0)
    keys = jax.random.split(key, 12)

    bound = 1.0 / math.sqrt(D)  # mimic nn.Linear default init range, deterministic
    params = {
        "wq": jax.random.uniform(keys[0], (D, D), jnp.float32, -bound, bound),
        "bq": jax.random.uniform(keys[1], (D,), jnp.float32, -bound, bound),
        "wk": jax.random.uniform(keys[2], (D, D), jnp.float32, -bound, bound),
        "bk": jax.random.uniform(keys[3], (D,), jnp.float32, -bound, bound),
        "wv": jax.random.uniform(keys[4], (D, D), jnp.float32, -bound, bound),
        "bv": jax.random.uniform(keys[5], (D,), jnp.float32, -bound, bound),
        "wo": jax.random.uniform(keys[6], (D, D), jnp.float32, -bound, bound),
        "bo": jax.random.uniform(keys[7], (D,), jnp.float32, -bound, bound),
    }

    q = jax.random.normal(keys[8], (B, S, D), jnp.float32)
    k = jax.random.normal(keys[9], (B, S, D), jnp.float32)
    v = jax.random.normal(keys[10], (B, S, D), jnp.float32)

    out = multi_head_attention(q, k, v, params, num_heads=H)
    out = jax.block_until_ready(out)

    ref = _reference(q, k, v, params, num_heads=H)
    assert out.shape == (B, S, D)
    # Slightly looser than 1e-4 because the softmax divide uses the hardware
    # approximate reciprocal (EUP) per the performance review.
    assert jnp.allclose(out, ref, atol=2e-3, rtol=2e-3), "mismatch vs reference"

    print("KERNEL_OK")
</pallas_src>

<mosaic_0001>
module attributes {stable_mosaic.version = 11 : i64} {
  func.func @_qkv_proj_kernel(%arg0: i32, %arg1: memref<16x32xf32, #tpu.memory_space<vmem>>, %arg2: memref<16x32xf32, #tpu.memory_space<vmem>>, %arg3: memref<16x32xf32, #tpu.memory_space<vmem>>, %arg4: memref<32x32xf32, #tpu.memory_space<vmem>>, %arg5: memref<1x32xf32, #tpu.memory_space<vmem>>, %arg6: memref<32x32xf32, #tpu.memory_space<vmem>>, %arg7: memref<1x32xf32, #tpu.memory_space<vmem>>, %arg8: memref<32x32xf32, #tpu.memory_space<vmem>>, %arg9: memref<1x32xf32, #tpu.memory_space<vmem>>, %arg10: memref<16x32xf32, #tpu.memory_space<vmem>>, %arg11: memref<16x32xf32, #tpu.memory_space<vmem>>, %arg12: memref<16x32xf32, #tpu.memory_space<vmem>>) attributes {dimension_semantics = [#tpu.dimension_semantics<parallel>], iteration_bounds = array<i64: 1>, scalar_prefetch = 0 : i64, scratch_operands = 0 : i64, tpu.core_type = #tpu.core_type<tc>, window_params = [{transform_indices = @transform_0, window_bounds = array<i64: 16, 32>}, {transform_indices = @transform_1, window_bounds = array<i64: 16, 32>}, {transform_indices = @transform_2, window_bounds = array<i64: 16, 32>}, {pipeline_mode = #tpu.pipeline_mode<synchronous>, transform_indices = @transform_3, window_bounds = array<i64: 32, 32>}, {pipeline_mode = #tpu.pipeline_mode<synchronous>, transform_indices = @transform_4, window_bounds = array<i64: 1, 32>}, {pipeline_mode = #tpu.pipeline_mode<synchronous>, transform_indices = @transform_5, window_bounds = array<i64: 32, 32>}, {pipeline_mode = #tpu.pipeline_mode<synchronous>, transform_indices = @transform_6, window_bounds = array<i64: 1, 32>}, {pipeline_mode = #tpu.pipeline_mode<synchronous>, transform_indices = @transform_7, window_bounds = array<i64: 32, 32>}, {pipeline_mode = #tpu.pipeline_mode<synchronous>, transform_indices = @transform_8, window_bounds = array<i64: 1, 32>}, {transform_indices = @transform_9, window_bounds = array<i64: 16, 32>}, {transform_indices = @transform_10, window_bounds = array<i64: 16, 32>}, {transform_indices = @transform_11, window_bounds = array<i64: 16, 32>}]} {
    %c0 = arith.constant 0 : index
    %c0_0 = arith.constant 0 : index
    %0 = vector.load %arg1[%c0, %c0_0] : memref<16x32xf32, #tpu.memory_space<vmem>>, vector<16x32xf32>
    %c0_1 = arith.constant 0 : index
    %c0_2 = arith.constant 0 : index
    %1 = vector.load %arg4[%c0_1, %c0_2] : memref<32x32xf32, #tpu.memory_space<vmem>>, vector<32x32xf32>
    %cst = arith.constant dense<0.000000e+00> : vector<16x32xf32>
    %2 = tpu.matmul %0, %1, %cst {dimension_numbers = #tpu.dot_dimension_numbers<[1], [0], [0], [1], [0, 0, 1, 1], [], []>} : vector<16x32xf32>, vector<32x32xf32>, vector<16x32xf32> -> vector<16x32xf32>
    %c0_3 = arith.constant 0 : index
    %c0_4 = arith.constant 0 : index
    %3 = vector.load %arg5[%c0_3, %c0_4] : memref<1x32xf32, #tpu.memory_space<vmem>>, vector<1x32xf32>
    %4 = vector.broadcast %3 : vector<1x32xf32> to vector<16x32xf32>
    %5 = arith.addf %2, %4 : vector<16x32xf32>
    %c0_5 = arith.constant 0 : index
    %c0_6 = arith.constant 0 : index
    %6 = vector.load %arg10[%c0_5, %c0_6] : memref<16x32xf32, #tpu.memory_space<vmem>>, vector<16x32xf32>
    tpu.vector_store %arg10[%c0_5, %c0_6], %5 {strides = array<i32>} : memref<16x32xf32, #tpu.memory_space<vmem>>, vector<16x32xf32>,
    %c0_7 = arith.constant 0 : index
    %c0_8 = arith.constant 0 : index
    %7 = vector.load %arg2[%c0_7, %c0_8] : memref<16x32xf32, #tpu.memory_space<vmem>>, vector<16x32xf32>
    %c0_9 = arith.constant 0 : index
    %c0_10 = arith.constant 0 : index
    %8 = vector.load %arg6[%c0_9, %c0_10] : memref<32x32xf32, #tpu.memory_space<vmem>>, vector<32x32xf32>
    %cst_11 = arith.constant dense<0.000000e+00> : vector<16x32xf32>
    %9 = tpu.matmul %7, %8, %cst_11 {dimension_numbers = #tpu.dot_dimension_numbers<[1], [0], [0], [1], [0, 0, 1, 1], [], []>} : vector<16x32xf32>, vector<32x32xf32>, vector<16x32xf32> -> vector<16x32xf32>
    %c0_12 = arith.constant 0 : index
    %c0_13 = arith.constant 0 : index
    %10 = vector.load %arg7[%c0_12, %c0_13] : memref<1x32xf32, #tpu.memory_space<vmem>>, vector<1x32xf32>
    %11 = vector.broadcast %10 : vector<1x32xf32> to vector<16x32xf32>
    %12 = arith.addf %9, %11 : vector<16x32xf32>
    %c0_14 = arith.constant 0 : index
    %c0_15 = arith.constant 0 : index
    %13 = vector.load %arg11[%c0_14, %c0_15] : memref<16x32xf32, #tpu.memory_space<vmem>>, vector<16x32xf32>
    tpu.vector_store %arg11[%c0_14, %c0_15], %12 {strides = array<i32>} : memref<16x32xf32, #tpu.memory_space<vmem>>, vector<16x32xf32>,
    %c0_16 = arith.constant 0 : index
    %c0_17 = arith.constant 0 : index
    %14 = vector.load %arg3[%c0_16, %c0_17] : memref<16x32xf32, #tpu.memory_space<vmem>>, vector<16x32xf32>
    %c0_18 = arith.constant 0 : index
    %c0_19 = arith.constant 0 : index
    %15 = vector.load %arg8[%c0_18, %c0_19] : memref<32x32xf32, #tpu.memory_space<vmem>>, vector<32x32xf32>
    %cst_20 = arith.constant dense<0.000000e+00> : vector<16x32xf32>
    %16 = tpu.matmul %14, %15, %cst_20 {dimension_numbers = #tpu.dot_dimension_numbers<[1], [0], [0], [1], [0, 0, 1, 1], [], []>} : vector<16x32xf32>, vector<32x32xf32>, vector<16x32xf32> -> vector<16x32xf32>
    %c0_21 = arith.constant 0 : index
    %c0_22 = arith.constant 0 : index
    %17 = vector.load %arg9[%c0_21, %c0_22] : memref<1x32xf32, #tpu.memory_space<vmem>>, vector<1x32xf32>
    %18 = vector.broadcast %17 : vector<1x32xf32> to vector<16x32xf32>
    %19 = arith.addf %16, %18 : vector<16x32xf32>
    %c0_23 = arith.constant 0 : index
    %c0_24 = arith.constant 0 : index
    %20 = vector.load %arg12[%c0_23, %c0_24] : memref<16x32xf32, #tpu.memory_space<vmem>>, vector<16x32xf32>
    tpu.vector_store %arg12[%c0_23, %c0_24], %19 {strides = array<i32>} : memref<16x32xf32, #tpu.memory_space<vmem>>, vector<16x32xf32>,
    return
  }
  func.func @transform_0(%arg0: i32) -> (i32, i32) {
    %c0_i32 = arith.constant 0 : i32
    %c0_i32_0 = arith.constant 0 : i32
    return %arg0, %c0_i32 : i32, i32
  }
  func.func @transform_1(%arg0: i32) -> (i32, i32) {
    %c0_i32 = arith.constant 0 : i32
    %c0_i32_0 = arith.constant 0 : i32
    return %arg0, %c0_i32 : i32, i32
  }
  func.func @transform_2(%arg0: i32) -> (i32, i32) {
    %c0_i32 = arith.constant 0 : i32
    %c0_i32_0 = arith.constant 0 : i32
    return %arg0, %c0_i32 : i32, i32
  }
  func.func @transform_3(%arg0: i32) -> (i32, i32) {
    %c0_i32 = arith.constant 0 : i32
    %c0_i32_0 = arith.constant 0 : i32
    %c0_i32_1 = arith.constant 0 : i32
    return %c0_i32, %c0_i32_0 : i32, i32
  }
  func.func @transform_4(%arg0: i32) -> (i32, i32) {
    %c0_i32 = arith.constant 0 : i32
    %c0_i32_0 = arith.constant 0 : i32
    %c0_i32_1 = arith.constant 0 : i32
    return %c0_i32, %c0_i32_0 : i32, i32
  }
  func.func @transform_5(%arg0: i32) -> (i32, i32) {
    %c0_i32 = arith.constant 0 : i32
    %c0_i32_0 = arith.constant 0 : i32
    %c0_i32_1 = arith.constant 0 : i32
    return %c0_i32, %c0_i32_0 : i32, i32
  }
  func.func @transform_6(%arg0: i32) -> (i32, i32) {
    %c0_i32 = arith.constant 0 : i32
    %c0_i32_0 = arith.constant 0 : i32
    %c0_i32_1 = arith.constant 0 : i32
    return %c0_i32, %c0_i32_0 : i32, i32
  }
  func.func @transform_7(%arg0: i32) -> (i32, i32) {
    %c0_i32 = arith.constant 0 : i32
    %c0_i32_0 = arith.constant 0 : i32
    %c0_i32_1 = arith.constant 0 : i32
    return %c0_i32, %c0_i32_0 : i32, i32
  }
  func.func @transform_8(%arg0: i32) -> (i32, i32) {
    %c0_i32 = arith.constant 0 : i32
    %c0_i32_0 = arith.constant 0 : i32
    %c0_i32_1 = arith.constant 0 : i32
    return %c0_i32, %c0_i32_0 : i32, i32
  }
  func.func @transform_9(%arg0: i32) -> (i32, i32) {
    %c0_i32 = arith.constant 0 : i32
    %c0_i32_0 = arith.constant 0 : i32
    return %arg0, %c0_i32 : i32, i32
  }
  func.func @transform_10(%arg0: i32) -> (i32, i32) {
    %c0_i32 = arith.constant 0 : i32
    %c0_i32_0 = arith.constant 0 : i32
    return %arg0, %c0_i32 : i32, i32
  }
  func.func @transform_11(%arg0: i32) -> (i32, i32) {
    %c0_i32 = arith.constant 0 : i32
    %c0_i32_0 = arith.constant 0 : i32
    return %arg0, %c0_i32 : i32, i32
  }
}

module attributes {stable_mosaic.version = 11 : i64} {
  func.func @_attn_out_kernel(%arg0: i32, %arg1: i32, %arg2: memref<1x4x8x8xf32, #tpu.memory_space<vmem>>, %arg3: memref<1x4x8x8xf32, #tpu.memory_space<vmem>>, %arg4: memref<1x4x8x8xf32, #tpu.memory_space<vmem>>, %arg5: memref<4x8x32xf32, #tpu.memory_space<vmem>>, %arg6: memref<1x32xf32, #tpu.memory_space<vmem>>, %arg7: memref<1x8x32xf32, #tpu.memory_space<vmem>>) attributes {dimension_semantics = [#tpu.dimension_semantics<parallel>, #tpu.dimension_semantics<parallel>], iteration_bounds = array<i64: 2, 1>, scalar_prefetch = 0 : i64, scratch_operands = 0 : i64, tpu.core_type = #tpu.core_type<tc>, window_params = [{transform_indices = @transform_0, window_bounds = array<i64: 1, 4, 8, 8>}, {transform_indices = @transform_1, window_bounds = array<i64: 1, 4, 8, 8>}, {transform_indices = @transform_2, window_bounds = array<i64: 1, 4, 8, 8>}, {pipeline_mode = #tpu.pipeline_mode<synchronous>, transform_indices = @transform_3, window_bounds = array<i64: 4, 8, 32>}, {pipeline_mode = #tpu.pipeline_mode<synchronous>, transform_indices = @transform_4, window_bounds = array<i64: 1, 32>}, {transform_indices = @transform_5, window_bounds = array<i64: 1, 8, 32>}]} {
    %c0 = arith.constant 0 : index
    %c0_0 = arith.constant 0 : index
    %c0_1 = arith.constant 0 : index
    %c0_2 = arith.constant 0 : index
    %0 = vector.load %arg2[%c0, %c0_0, %c0_1, %c0_2] : memref<1x4x8x8xf32, #tpu.memory_space<vmem>>, vector<1x4x8x8xf32>
    %1 = vector.shape_cast %0 : vector<1x4x8x8xf32> to vector<4x8x8xf32>
    %c0_3 = arith.constant 0 : index
    %c0_4 = arith.constant 0 : index
    %c0_5 = arith.constant 0 : index
    %c0_6 = arith.constant 0 : index
    %2 = vector.load %arg3[%c0_3, %c0_4, %c0_5, %c0_6] : memref<1x4x8x8xf32, #tpu.memory_space<vmem>>, vector<1x4x8x8xf32>
    %3 = vector.shape_cast %2 : vector<1x4x8x8xf32> to vector<4x8x8xf32>
    %c0_7 = arith.constant 0 : index
    %c0_8 = arith.constant 0 : index
    %c0_9 = arith.constant 0 : index
    %c0_10 = arith.constant 0 : index
    %4 = vector.load %arg4[%c0_7, %c0_8, %c0_9, %c0_10] : memref<1x4x8x8xf32, #tpu.memory_space<vmem>>, vector<1x4x8x8xf32>
    %5 = vector.shape_cast %4 : vector<1x4x8x8xf32> to vector<4x8x8xf32>
    "tpu.trace_start"() <{level = 10 : i32, message = "hqd,hkd->hqk"}> : () -> ()
    %cst = arith.constant dense<0.000000e+00> : vector<4x8x8xf32>
    %6 = tpu.matmul %1, %3, %cst {dimension_numbers = #tpu.dot_dimension_numbers<[2], [2], [1], [1], [0, 0, 0, 1, 1, 1], [0], [0]>} : vector<4x8x8xf32>, vector<4x8x8xf32>, vector<4x8x8xf32> -> vector<4x8x8xf32>
    "tpu.trace_stop"() : () -> ()
    %cst_11 = arith.constant dense<0xFF800000> : vector<4x8xf32>
    %7 = vector.multi_reduction <maximumf>, %6, %cst_11 [2] : vector<4x8x8xf32> to vector<4x8xf32>
    %8 = vector.shape_cast %7 : vector<4x8xf32> to vector<4x8x1xf32>
    %9 = vector.broadcast %8 : vector<4x8x1xf32> to vector<4x8x8xf32>
    %10 = arith.subf %6, %9 : vector<4x8x8xf32>
    %11 = math.exp %10 : vector<4x8x8xf32>
    %cst_12 = arith.constant dense<0.000000e+00> : vector<4x8xf32>
    %12 = vector.multi_reduction <add>, %11, %cst_12 [2] : vector<4x8x8xf32> to vector<4x8xf32>
    %13 = vector.shape_cast %12 : vector<4x8xf32> to vector<4x8x1xf32>
    %14 = tpu.reciprocal %13 {approx = true} : vector<4x8x1xf32> -> vector<4x8x1xf32>
    %15 = vector.broadcast %14 : vector<4x8x1xf32> to vector<4x8x8xf32>
    %16 = arith.mulf %11, %15 : vector<4x8x8xf32>
    "tpu.trace_start"() <{level = 10 : i32, message = "hqk,hkd->hqd"}> : () -> ()
    %cst_13 = arith.constant dense<0.000000e+00> : vector<4x8x8xf32>
    %17 = tpu.matmul %16, %5, %cst_13 {dimension_numbers = #tpu.dot_dimension_numbers<[2], [1], [1], [2], [0, 0, 0, 1, 1, 2], [0], [0]>} : vector<4x8x8xf32>, vector<4x8x8xf32>, vector<4x8x8xf32> -> vector<4x8x8xf32>
    "tpu.trace_stop"() : () -> ()
    %18 = vector.extract_strided_slice %17 {offsets = [0, 0, 0], sizes = [1, 8, 8], strides = [1, 1, 1]} : vector<4x8x8xf32> to vector<1x8x8xf32>
    %19 = vector.shape_cast %18 : vector<1x8x8xf32> to vector<8x8xf32>
    %c0_14 = arith.constant 0 : index
    %c0_15 = arith.constant 0 : index
    %c0_16 = arith.constant 0 : index
    %20 = vector.load %arg5[%c0_14, %c0_15, %c0_16] : memref<4x8x32xf32, #tpu.memory_space<vmem>>, vector<1x8x32xf32>
    %21 = vector.shape_cast %20 : vector<1x8x32xf32> to vector<8x32xf32>
    %cst_17 = arith.constant dense<0.000000e+00> : vector<8x32xf32>
    %22 = tpu.matmul %19, %21, %cst_17 {dimension_numbers = #tpu.dot_dimension_numbers<[1], [0], [0], [1], [0, 0, 1, 1], [], []>} : vector<8x8xf32>, vector<8x32xf32>, vector<8x32xf32> -> vector<8x32xf32>
    %23 = vector.extract_strided_slice %17 {offsets = [1, 0, 0], sizes = [1, 8, 8], strides = [1, 1, 1]} : vector<4x8x8xf32> to vector<1x8x8xf32>
    %24 = vector.shape_cast %23 : vector<1x8x8xf32> to vector<8x8xf32>
    %c1 = arith.constant 1 : index
    %c0_18 = arith.constant 0 : index
    %c0_19 = arith.constant 0 : index
    %25 = vector.load %arg5[%c1, %c0_18, %c0_19] : memref<4x8x32xf32, #tpu.memory_space<vmem>>, vector<1x8x32xf32>
    %26 = vector.shape_cast %25 : vector<1x8x32xf32> to vector<8x32xf32>
    %cst_20 = arith.constant dense<0.000000e+00> : vector<8x32xf32>
    %27 = tpu.matmul %24, %26, %cst_20 {dimension_numbers = #tpu.dot_dimension_numbers<[1], [0], [0], [1], [0, 0, 1, 1], [], []>} : vector<8x8xf32>, vector<8x32xf32>, vector<8x32xf32> -> vector<8x32xf32>
    %28 = arith.addf %22, %27 : vector<8x32xf32>
    %29 = vector.extract_strided_slice %17 {offsets = [2, 0, 0], sizes = [1, 8, 8], strides = [1, 1, 1]} : vector<4x8x8xf32> to vector<1x8x8xf32>
    %30 = vector.shape_cast %29 : vector<1x8x8xf32> to vector<8x8xf32>
    %c2 = arith.constant 2 : index
    %c0_21 = arith.constant 0 : index
    %c0_22 = arith.constant 0 : index
    %31 = vector.load %arg5[%c2, %c0_21, %c0_22] : memref<4x8x32xf32, #tpu.memory_space<vmem>>, vector<1x8x32xf32>
    %32 = vector.shape_cast %31 : vector<1x8x32xf32> to vector<8x32xf32>
    %cst_23 = arith.constant dense<0.000000e+00> : vector<8x32xf32>
    %33 = tpu.matmul %30, %32, %cst_23 {dimension_numbers = #tpu.dot_dimension_numbers<[1], [0], [0], [1], [0, 0, 1, 1], [], []>} : vector<8x8xf32>, vector<8x32xf32>, vector<8x32xf32> -> vector<8x32xf32>
    %34 = arith.addf %28, %33 : vector<8x32xf32>
    %35 = vector.extract_strided_slice %17 {offsets = [3, 0, 0], sizes = [1, 8, 8], strides = [1, 1, 1]} : vector<4x8x8xf32> to vector<1x8x8xf32>
    %36 = vector.shape_cast %35 : vector<1x8x8xf32> to vector<8x8xf32>
    %c3 = arith.constant 3 : index
    %c0_24 = arith.constant 0 : index
    %c0_25 = arith.constant 0 : index
    %37 = vector.load %arg5[%c3, %c0_24, %c0_25] : memref<4x8x32xf32, #tpu.memory_space<vmem>>, vector<1x8x32xf32>
    %38 = vector.shape_cast %37 : vector<1x8x32xf32> to vector<8x32xf32>
    %cst_26 = arith.constant dense<0.000000e+00> : vector<8x32xf32>
    %39 = tpu.matmul %36, %38, %cst_26 {dimension_numbers = #tpu.dot_dimension_numbers<[1], [0], [0], [1], [0, 0, 1, 1], [], []>} : vector<8x8xf32>, vector<8x32xf32>, vector<8x32xf32> -> vector<8x32xf32>
    %40 = arith.addf %34, %39 : vector<8x32xf32>
    %c0_27 = arith.constant 0 : index
    %c0_28 = arith.constant 0 : index
    %41 = vector.load %arg6[%c0_27, %c0_28] : memref<1x32xf32, #tpu.memory_space<vmem>>, vector<1x32xf32>
    %42 = vector.broadcast %41 : vector<1x32xf32> to vector<8x32xf32>
    %43 = arith.addf %40, %42 : vector<8x32xf32>
    %c0_29 = arith.constant 0 : index
    %c0_30 = arith.constant 0 : index
    %c0_31 = arith.constant 0 : index
    %44 = vector.load %arg7[%c0_29, %c0_30, %c0_31] : memref<1x8x32xf32, #tpu.memory_space<vmem>>, vector<1x8x32xf32>
    %45 = vector.shape_cast %44 : vector<1x8x32xf32> to vector<8x32xf32>
    %46 = vector.shape_cast %43 : vector<8x32xf32> to vector<1x8x32xf32>
    tpu.vector_store %arg7[%c0_29, %c0_30, %c0_31], %46 {strides = array<i32>} : memref<1x8x32xf32, #tpu.memory_space<vmem>>, vector<1x8x32xf32>,
    return
  }
  func.func @transform_0(%arg0: i32, %arg1: i32) -> (i32, i32, i32, i32) {
    %c0_i32 = arith.constant 0 : i32
    %c0_i32_0 = arith.constant 0 : i32
    %c0_i32_1 = arith.constant 0 : i32
    return %arg0, %c0_i32, %arg1, %c0_i32_0 : i32, i32, i32, i32
  }
  func.func @transform_1(%arg0: i32, %arg1: i32) -> (i32, i32, i32, i32) {
    %c0_i32 = arith.constant 0 : i32
    %c0_i32_0 = arith.constant 0 : i32
    %c0_i32_1 = arith.constant 0 : i32
    %c0_i32_2 = arith.constant 0 : i32
    return %arg0, %c0_i32, %c0_i32_0, %c0_i32_1 : i32, i32, i32, i32
  }
  func.func @transform_2(%arg0: i32, %arg1: i32) -> (i32, i32, i32, i32) {
    %c0_i32 = arith.constant 0 : i32
    %c0_i32_0 = arith.constant 0 : i32
    %c0_i32_1 = arith.constant 0 : i32
    %c0_i32_2 = arith.constant 0 : i32
    return %arg0, %c0_i32, %c0_i32_0, %c0_i32_1 : i32, i32, i32, i32
  }
  func.func @transform_3(%arg0: i32, %arg1: i32) -> (i32, i32, i32) {
    %c0_i32 = arith.constant 0 : i32
    %c0_i32_0 = arith.constant 0 : i32
    %c0_i32_1 = arith.constant 0 : i32
    %c0_i32_2 = arith.constant 0 : i32
    return %c0_i32, %c0_i32_0, %c0_i32_1 : i32, i32, i32
  }
  func.func @transform_4(%arg0: i32, %arg1: i32) -> (i32, i32) {
    %c0_i32 = arith.constant 0 : i32
    %c0_i32_0 = arith.constant 0 : i32
    %c0_i32_1 = arith.constant 0 : i32
    return %c0_i32, %c0_i32_0 : i32, i32
  }
  func.func @transform_5(%arg0: i32, %arg1: i32) -> (i32, i32, i32) {
    %c0_i32 = arith.constant 0 : i32
    %c0_i32_0 = arith.constant 0 : i32
    return %arg0, %arg1, %c0_i32 : i32, i32, i32
  }
}

</mosaic_0001>

<bundles_post_ra>
// kernel: multi_head_attention.2
= control target key start
LH: loop header
LB: loop body
LE: loop exit
PB: predicated region body
PF: predicated region fallthrough
CT: control target
= control target key end

     0   :  { %vm48_vm0 = vcmask 261120   ;;  %s573_s3 = inlined_call_operand.vmem [shape: f32[32,32], index: 3, kind: input, shape index: {}]   ;;  %s574_s0 = inlined_call_operand.vmem [shape: f32[16,32], index: 0, kind: input, shape index: {}]   ;;  %s575_s5 = inlined_call_operand.vmem [shape: f32[32,32], index: 5, kind: input, shape index: {}]   ;;  %s576_s7 = inlined_call_operand.vmem [shape: f32[32,32], index: 7, kind: input, shape index: {}]   ;;  %s577_s1 = inlined_call_operand.vmem [shape: f32[16,32], index: 1, kind: input, shape index: {}]   ;;  %s578_s2 = inlined_call_operand.vmem [shape: f32[16,32], index: 2, kind: input, shape index: {}]   ;;  %s579_s4 = inlined_call_operand.vmem [shape: f32[1,32], index: 4, kind: input, shape index: {}]   ;;  %s580_s6 = inlined_call_operand.vmem [shape: f32[1,32], index: 6, kind: input, shape index: {}]   ;;  %s581_s9 = inlined_call_operand.vmem [shape: f32[16,32], index: 9, kind: output, shape index: {0}]   ;;  %s582_s10 = inlined_call_operand.vmem [shape: f32[16,32], index: 10, kind: output, shape index: {1}]   ;;  %s583_s8 = inlined_call_operand.vmem [shape: f32[1,32], index: 8, kind: input, shape index: {}]   ;;  %s584_s11 = inlined_call_operand.vmem [shape: f32[16,32], index: 11, kind: output, shape index: {2}]  }
   0x1   :  { %v37_v0 = vld [vmem:[%s573_s3] sm:$0xff]  ;;  %v38_v1 = vld [vmem:[%s573_s3 + $0x8] sm:$0xff]  ;;  %v39_v2 = vld [vmem:[%s573_s3 + $0x10] sm:$0xff] }
   0x2   :  { %v396_v3 = vpack.c.bf16 %v38_v1, %v37_v0  ;;  %v40_v4 = vld [vmem:[%s573_s3 + $0x18] sm:$0xff]  ;;  %v35_v5 = vld [vmem:[%s574_s0] sm:$0xff]  ;;  %v135_v8 = vld [vmem:[%s575_s5 + $0x8] sm:$0xff] }
   0x3   :  { %v400_v6 = vpack.c.bf16 %v40_v4, %v39_v2  ;;  %371 = vmatprep.mubr.msk.f32.mxu0 %vm48_vm0, %v35_v5  ;;  %v134_v7 = vld [vmem:[%s575_s5] sm:$0xff]  ;;  %v231_v11 = vld [vmem:[%s576_s7 + $0x8] sm:$0xff]  ;;  %v136_v12 = vld [vmem:[%s575_s5 + $0x10] sm:$0xff] }
   0x4   :  { %v230_v9 = vld [vmem:[%s576_s7] sm:$0xff]  ;;  %397 = vmatprep.subr.bf16.mxu0 %v396_v3  ;;  %v404_v10 = vpack.c.bf16 %v135_v8, %v134_v7  ;;  %v137_v13 = vld [vmem:[%s575_s5 + $0x18] sm:$0xff]  ;;  %v232_v17 = vld [vmem:[%s576_s7 + $0x10] sm:$0xff] }
   0x5   :  { %399 = vmatpush3.bf16.msra.mxu0 %v396_v3  ;;  %v408_v14 = vpack.c.bf16 %v137_v13, %v136_v12  ;;  %v132_v15 = vld [vmem:[%s577_s1] sm:$0xff]  ;;  %v412_v16 = vpack.c.bf16 %v231_v11, %v230_v9  ;;  %v233_v18 = vld [vmem:[%s576_s7 + $0x18] sm:$0xff]  ;;  %v36_v19 = vld [vmem:[%s574_s0 + $0x8] sm:$0xff] }
   0x6   :  { %401 = vmatprep.subr.bf16.mxu0 %v400_v6  ;;  %405 = vmatprep.subr.bf16.mxu1 %v404_v10  ;;  %v416_v20 = vpack.c.bf16 %v233_v18, %v232_v17  ;;  %v228_v21 = vld [vmem:[%s578_s2] sm:$0xff]  ;;  %v133_v22 = vld [vmem:[%s577_s1 + $0x8] sm:$0xff] }
   0x7   :  { %407 = vmatpush3.bf16.msra.mxu1 %v404_v10  ;;  %382 = vmatprep.mubr.msk.f32.mxu1 %vm48_vm0, %v132_v15  ;;  %v229_v23 = vld [vmem:[%s578_s2 + $0x8] sm:$0xff]  ;;  %v336_v24 = vld [vmem:[%s579_s4] ss:$0 sm:$0xff] }
   0x8   :  { %409 = vmatprep.subr.bf16.mxu1 %v408_v14  ;;  %v339_v26 = vld [vmem:[%s580_s6] ss:$0 sm:$0xff] }
   0x9   :  { %403 = vmatpush3.bf16.msra.mxu0 %v400_v6  ;;  %v342_v34 = vld [vmem:[%s583_s8] ss:$0 sm:$0xff] }
   0xa   :  { %413 = vmatprep.subr.bf16.mxu0 %v412_v16 }
   0xb   :  { %411 = vmatpush3.bf16.msra.mxu1 %v408_v14 }
   0xc   :  { %372 = vmatmul.mubr.msk.f32.vlgmr.msra.gmra.mrb[0].mxu0 %vm48_vm0, %v36_v19 }
   0xd   :  { %415 = vmatpush3.bf16.msra.mxu0 %v412_v16  ;;  %393 = vmatprep.mubr.msk.f32.mxu0 %vm48_vm0, %v228_v21 }
   0xe   :  { %417 = vmatprep.subr.bf16.mxu0 %v416_v20  ;;  %383 = vmatmul.mubr.msk.f32.vlgmr.msra.gmra.mrb[0].mxu1 %vm48_vm0, %v133_v22 }
  0x11   :  { %419 = vmatpush3.bf16.msra.mxu0 %v416_v20 }
  0x14   :  { %394 = vmatmul.mubr.msk.f32.vlgmr.msra.gmra.mrb[2].mxu0 %vm48_vm0, %v229_v23 }
  0xdf   :  { %v373_v25 = vpop.f32.mrb[0].mxu0 }
  0xe0   :  { %v127_v27 = vadd.f32 %v373_v25, %v336_v24  ;;  %v121_v28 = vpop.f32.mrb[1].mxu0 }
  0xe1   :  { %v122_v29 = vadd.f32 %v336_v24, %v121_v28  ;;  %v384_v30 = vpop.f32.mrb[0].mxu1 }
  0xe2   :  { %131 = vst.msk [vmem:[%s581_s9 + $0x8] sm:$0xff] %vm48_vm0, %v127_v27  ;;  %v223_v31 = vadd.f32 %v384_v30, %v339_v26  ;;  %v217_v32 = vpop.f32.mrb[1].mxu1 }
  0xe3   :  { %130 = vst.msk [vmem:[%s581_s9] sm:$0xff] %vm48_vm0, %v122_v29  ;;  %v218_v33 = vadd.f32 %v339_v26, %v217_v32 }
  0xe4   :  { %227 = vst.msk [vmem:[%s582_s10 + $0x8] sm:$0xff] %vm48_vm0, %v223_v31 }
  0xe5   :  { %226 = vst.msk [vmem:[%s582_s10] sm:$0xff] %vm48_vm0, %v218_v33 }
  0xe7   :  { %v395_v35 = vpop.f32.mrb[2].mxu0 }
  0xe8   :  { %v319_v36 = vadd.f32 %v395_v35, %v342_v34  ;;  %v313_v37 = vpop.f32.mrb[3].mxu0 }
  0xe9   :  { %v314_v38 = vadd.f32 %v342_v34, %v313_v37 }
  0xea   :  { %323 = vst.msk [vmem:[%s584_s11 + $0x8] sm:$0xff] %vm48_vm0, %v319_v36 }
  0xeb   :  { %322 = vst.msk [vmem:[%s584_s11] sm:$0xff] %vm48_vm0, %v314_v38 }

// kernel: multi_head_attention.3
= control target key start
LH: loop header
LB: loop body
LE: loop exit
PB: predicated region body
PF: predicated region fallthrough
CT: control target
= control target key end

     0   :  { %10 = vsyncpa [#allocation3], 0  ;;  %s1872_s0 = inlined_call_operand.vmem [shape: f32[2,4,8,8], index: 0, kind: input, shape index: {}]   ;;  %s1873_s1 = inlined_call_operand.vmem [shape: f32[2,4,8,8], index: 1, kind: input, shape index: {}]   ;;  %s1874_s2 = inlined_call_operand.vmem [shape: f32[2,4,8,8], index: 2, kind: input, shape index: {}]   ;;  %s1875_s3 = inlined_call_operand.vmem [shape: f32[4,8,32], index: 3, kind: input, shape index: {}]   ;;  %s1876_s4 = inlined_call_operand.vmem [shape: f32[1,32], index: 4, kind: input, shape index: {}]   ;;  %s1877_s5 = inlined_call_operand.hbm [shape: f32[2,8,32], index: 5, kind: output, shape index: {}]  }
   0x1   :  { %12 = vsyncpa [#allocation3 + $0x1], 0  ;;  %s1674_s18 = smov 0   ;;  %s1676_s19 = smov 0  }
   0x2   :  { %s1678_s20 = smov 0   ;;  %s1680_s21 = smov 0  }
   0x3   :  { %s1682_s22 = smov 0   ;;  %s1684_s23 = smov 0  }
   0x4 LB: > { %s1365_s24 = sadd.s32 4294967295, %s1639_s23   ;;  %s1366_s25 = sadd.s32 4294967294, %s1639_s23   ;;  %s1639_s23 = sphi %s1684_s23, %s18_s23   ;;  %s1635_s22 = sphi %s1682_s22, %s1884_s22   ;;  %s1631_s21 = sphi %s1680_s21, %s1883_s21   ;;  %s1627_s20 = sphi %s1678_s20, %s1882_s20   ;;  %s1623_s19 = sphi %s1676_s19, %s1881_s19   ;;  %s1619_s18 = sphi %s1674_s18, %s1880_s18  }
   0x5   : > { %s30_s26 = sadd.s32 1, %s1635_s22  ;;  %s161_s27 = sadd.s32 1, %s1627_s20 }
   0x6   : > { %p32_p0 = scmp.ge.s32.totalorder %s30_s26, 2  ;;  %p171_p1 = scmp.ne.s32.totalorder %s1627_s20, %s1623_s19 }
   0x7   : > { %p172_p2 = scmp.eq.s32.totalorder %s1365_s24, 1  ;;  %p177_p3 = scmp.ne.s32.totalorder %s1623_s19, %s1619_s18 }
   0x8   : > { %s1886_s26 = smov (%p32_p0, %s30_s26), 0  ;;  %p178_p5 = scmp.eq.s32.totalorder %s1366_s25, 1 }
   0x9   : > { %p1714_p4 = por %p172_p2, %p171_p1  ;;  %s156_s29 = ssub.s32 %s1635_s22, %s1886_s26 }
   0xa   : > { %p1369_p6 = scmp.ge.s32.totalorder %s1639_s23, 1  ;;  %p159_p7 = scmp.eq.s32.totalorder %s156_s29, 0 }
   0xb   : > { %p1721_p8 = por %p178_p5, %p177_p3  ;;  %p229_p9 = scmp.lt.s32.totalorder %s1639_s23, 3 }
   0xc   : > { %s1727_s6 = scalar_select %p159_p7, %s1627_s20, %s161_s27  }
   0xd   : > { %p230_p10 = pnand %p1369_p6, %p229_p9 }
   0xe   : > { %p270_p11 = scmp.lt.s32.totalorder (!%p230_p10), %s1631_s21, 1  ;;  %v1641_v0 = vmov (!%p230_p10), 0.0   ;;  %vm1642_vm0 = vmmov (!%p230_p10), 0   ;;  %vm300_vm1 = vcmask (!%p230_p10), 64512   ;;  %v941_v57 = vld [vmem:[%s1875_s3] sm:$0xff] (!%p230_p10)  ;;  %v1389_v58 = vld [vmem:[%s1875_s3 + $0x8] sm:$0xff] (!%p230_p10) }
   0xf   : > { %233 = sbr.rel (%p230_p10) target bundleno = 1008 (0x3f0), region = 40  ;;  %1428 = vmatprep.subr.mxu0 (!%p230_p10), %v1641_v0  ;;  %1430 = vmatprep.mubr.msk.f32.mxu0 (!%p230_p10), %vm1642_vm0, %v1641_v0  ;;  %v1394_v59 = vld [vmem:[%s1875_s3 + $0x18] sm:$0xff] (!%p230_p10)  ;;  %v1392_v62 = vld [vmem:[%s1875_s3 + $0x10] sm:$0xff] (!%p230_p10)  ;;  %s1398_s15 = sshll.u32 (!%p230_p10), %s1631_s21, 7  ;;  %vm1250_vm2 = vcmask (!%p230_p10), 261120  }
  0x10   : > { %1433 = vmatprep.subr.mxu1 (!%p230_p10), %v1641_v0  ;;  %1435 = vmatprep.mubr.msk.f32.mxu1 (!%p230_p10), %vm1642_vm0, %v1641_v0  ;;  %s1825_s27 = scalar_lea.hbm (!%p230_p10), %s1877_s5, %s1398_s15 }
  0x16   : > { %s271_s7 = scalar_select %p270_p11, %s1631_s21, 1 }
  0x17   : > { %s1643_s21 = smov [#allocation2]  }
  0x18   : > { %s1737_s8 = sshll.u32 %s271_s7, 5 }
  0x19   : > { %s282_s11 = scalar_lea.vmem %s1873_s1, %s1737_s8  ;;  %s277_s14 = scalar_lea.vmem %s1872_s0, %s1737_s8 }
  0x1a   : > { %v292_v1 = vld [vmem:[%s282_s11] sm:$0xff]  ;;  %v293_v2 = vld [vmem:[%s282_s11 + $0x8] sm:$0xff]  ;;  %v294_v5 = vld [vmem:[%s282_s11 + $0x10] sm:$0xff]  ;;  %s287_s17 = scalar_lea.vmem %s1874_s2, %s1737_s8  ;;  %s1565_s8 = sshll.u32 %s1643_s21, 4  ;;  %s1566_s8 = int_to_ptr.vmem [resolvable:$false] %s1565_s8 }
  0x1b   : > { %1429 = vmatpush3.xpose.msk.msra.mxu0 %vm300_vm1, %v292_v1  ;;  %v288_v3 = vld [vmem:[%s277_s14] sm:$0xff]  ;;  %1434 = vmatpush3.xpose.msk.msra.mxu1 %vm300_vm1, %v293_v2  ;;  %v289_v4 = vld [vmem:[%s277_s14 + $0x8] sm:$0xff]  ;;  %v295_v6 = vld [vmem:[%s282_s11 + $0x18] sm:$0xff]  ;;  %s267_s11 = sand.u32 1, %s1623_s19   ;;  %s1567_s9 = scalar_lea.vmem %s1566_s8, 256 }
  0x1c   : > { %1438 = vmatprep.subr.mxu0 %v1641_v0  ;;  %1443 = vmatprep.subr.mxu1 %v1641_v0  ;;  %v290_v7 = vld [vmem:[%s277_s14 + $0x10] sm:$0xff]  ;;  %v291_v8 = vld [vmem:[%s277_s14 + $0x18] sm:$0xff]  ;;  %v296_v41 = vld [vmem:[%s287_s17] sm:$0xff]  ;;  %s1370_s12 = sshll.u32 %s267_s11, 3  ;;  %s1253_s29 = scalar_lea.sflag [#allocation3], %s267_s11 }
  0x1d   : > { %v297_v42 = vld [vmem:[%s287_s17 + $0x8] sm:$0xff]  ;;  %v298_v49 = vld [vmem:[%s287_s17 + $0x10] sm:$0xff]  ;;  %v299_v53 = vld [vmem:[%s287_s17 + $0x18] sm:$0xff]  ;;  %s269_s16 = scalar_lea.vmem [#allocation2], %s1370_s12 }
  0x1e   : > { %1431 = vmatmul.mubr.msk.f32.vlgmr.msra.gmra.mrb[0].mxu0 %vm300_vm1, %v288_v3  ;;  %1436 = vmatmul.mubr.msk.f32.vlgmr.msra.gmra.mrb[0].mxu1 %vm300_vm1, %v289_v4  ;;  %s1267_s17 = sshll.u32 %s269_s16, 4  ;;  %s1827_s17 = int_to_ptr.vmem [resolvable:$true] %s1267_s17 }
  0x1f   : > { %1439 = vmatpush3.xpose.msk.msra.mxu0 %vm300_vm1, %v294_v5  ;;  %1440 = vmatprep.mubr.msk.f32.mxu0 %vm1642_vm0, %v1641_v0  ;;  %s1561_s7 = scalar_lea.vmem %s1827_s17, 128  ;;  %p1568_p1 = scmp.lt.s32.totalorder %s1827_s17, %s1566_s8 }
  0x20   : > { %1444 = vmatpush3.xpose.msk.msra.mxu1 %vm300_vm1, %v295_v6  ;;  %1445 = vmatprep.mubr.msk.f32.mxu1 %vm1642_vm0, %v1641_v0  ;;  %p1562_p12 = scmp.ne.s32.totalorder %s1827_s17, %s1561_s7  ;;  %p1569_p2 = scmp.lt.s32.totalorder %s1567_s9, %s1561_s7 }
  0x21   : > { %1448 = vmatprep.subr.mxu0 %v1641_v0  ;;  %1453 = vmatprep.subr.mxu1 %v1641_v0 }
  0x22   : > { %1441 = vmatmul.mubr.msk.f32.vlgmr.msra.gmra.mrb[2].mxu0 %vm300_vm1, %v290_v7  ;;  %p1563_p13 = pnand %p1562_p12, %p1714_p4  ;;  %p1570_p3 = por %p1569_p2, %p1568_p1 }
  0x23   : > { %1446 = vmatmul.mubr.msk.f32.vlgmr.msra.gmra.mrb[2].mxu1 %vm300_vm1, %v291_v8  ;;  %1450 = vmatprep.mubr.msk.f32.mxu0 %vm1642_vm0, %v1641_v0 }
  0x24   : > { %1455 = vmatprep.mubr.msk.f32.mxu1 %vm1642_vm0, %v1641_v0  ;;  %1449 = vmatpush3.msra.mxu0 %v296_v41  ;;  %p1564_p0 = pneg %p1563_p13 }
  0x25   : > { %1458 = vmatprep.subr.mxu0 %v1641_v0  ;;  %1454 = vmatpush3.msra.mxu1 %v297_v42 }
  0x26   : > { %1463 = vmatprep.subr.mxu1 %v1641_v0  ;;  %p1571_p5 = pnand %p1570_p3, %p1564_p0 }
  0xf1   : > { %v373_v9 = vpop.f32.mrb[0].mxu0  ;;  %v449_v10 = vpop.f32.mrb[0].mxu1 }
  0xf2   : > { %v1432_v11 = vpop.f32.mrb[1].mxu0  ;;  %v605_v12 = vsel %vm300_vm1, %v373_v9, -inf  ;;  %v1437_v13 = vpop.f32.mrb[1].mxu1  ;;  %v608_v14 = vsel %vm300_vm1, %v449_v10, -inf }
  0xf3   : > { %606 = vmax.xlane.f32.xlu0 %v605_v12 }
  0xf5   : > { %v525_v15 = vpop.f32.mrb[2].mxu0 }
  0xf6   : > { %v611_v16 = vsel %vm300_vm1, %v525_v15, -inf  ;;  %v1442_v17 = vpop.f32.mrb[3].mxu0  ;;  %v601_v18 = vpop.f32.mrb[2].mxu1 }
  0xf7   : > { %609 = vmax.xlane.f32.xlu0 %v608_v14  ;;  %612 = vmax.xlane.f32.xlu1 %v611_v16  ;;  %v1447_v19 = vpop.f32.mrb[3].mxu1  ;;  %v614_v20 = vsel %vm300_vm1, %v601_v18, -inf }
  0xfb   : > { %615 = vmax.xlane.f32.xlu1 %v614_v20 }
 0x180   : > { %v607_v21 = vpop.xlane.xlu0 %606 }
 0x181   : > { %v617_v22 = vsub.f32 %v373_v9, %v607_v21 }
 0x183   : > { %v621_v23 = vmul.f32 1.442695, %v617_v22 }
 0x184   : > { %v610_v24 = vpop.xlane.xlu0 %609  ;;  %v613_v25 = vpop.xlane.xlu1 %612 }
 0x185   : > { %1545 = vpow2.f32 %v621_v23  ;;  %v618_v26 = vsub.f32 %v449_v10, %v610_v24  ;;  %v619_v27 = vsub.f32 %v525_v15, %v613_v25  ;;  %v1396_v15 = vld [vmem:[%s1876_s4] ss:$0 sm:$0xff] }
 0x187   : > { %v623_v28 = vmul.f32 1.442695, %v618_v26  ;;  %v625_v29 = vmul.f32 1.442695, %v619_v27 }
 0x188   : > { %v616_v30 = vpop.xlane.xlu1 %615 }
 0x189   : > { %1547 = vpow2.f32 %v623_v28  ;;  %v620_v31 = vsub.f32 %v601_v18, %v616_v30 }
 0x18a   : > { %1549 = vpow2.f32 %v625_v29 }
 0x18b   : > { %v627_v32 = vmul.f32 1.442695, %v620_v31 }
 0x18d   : > { %1551 = vpow2.f32 %v627_v32 }
 0x18f   : > { %v1546_v33 = vpop.eup %1545 }
 0x190   : > { %v629_v34 = vsel %vm300_vm1, %v1546_v33, 0.0 }
 0x191   : > { %630 = vadd.xlane.f32.xlu0 %v629_v34 }
 0x193   : > { %v1548_v35 = vpop.eup %1547 }
 0x194   : > { %v1550_v36 = vpop.eup %1549  ;;  %v632_v37 = vsel %vm300_vm1, %v1548_v35, 0.0 }
 0x195   : > { %633 = vadd.xlane.f32.xlu1 %v632_v37  ;;  %v635_v38 = vsel %vm300_vm1, %v1550_v36, 0.0 }
 0x196   : > { %636 = vadd.xlane.f32.xlu0 %v635_v38 }
 0x197   : > { %v1552_v39 = vpop.eup %1551 }
 0x198   : > { %v638_v40 = vsel %vm300_vm1, %v1552_v39, 0.0 }
 0x199   : > { %639 = vadd.xlane.f32.xlu1 %v638_v40 }
 0x21e   : > { %v631_v43 = vpop.xlane.xlu0 %630 }
 0x21f   : > { %1553 = vrcp.f32 %v631_v43 }
 0x222   : > { %v634_v44 = vpop.xlane.xlu1 %633 }
 0x223   : > { %v637_v45 = vpop.xlane.xlu0 %636  ;;  %1555 = vrcp.f32 %v634_v44 }
 0x224   : > { %1557 = vrcp.f32 %v637_v45 }
 0x226   : > { %v640_v46 = vpop.xlane.xlu1 %639 }
 0x227   : > { %1559 = vrcp.f32 %v640_v46 }
 0x229   : > { %v1554_v47 = vpop.eup %1553 }
 0x22a   : > { %v645_v48 = vmul.f32 %v1554_v47, %v1546_v33 }
 0x22c   : > { %1451 = vmatmul.mubr.msk.f32.vlgmr.msra.gmra.mrb[4].mxu0 %vm300_vm1, %v645_v48 }
 0x22d   : > { %v1556_v50 = vpop.eup %1555  ;;  %1459 = vmatpush3.msra.mxu0 %v298_v49  ;;  %1460 = vmatprep.mubr.msk.f32.mxu0 %vm1642_vm0, %v1641_v0 }
 0x22e   : > { %v1558_v51 = vpop.eup %1557  ;;  %v646_v52 = vmul.f32 %v1556_v50, %v1548_v35  ;;  %1468 = vmatprep.subr.mxu0 %v1641_v0 }
 0x22f   : > { %v647_v54 = vmul.f32 %v1558_v51, %v1550_v36 }
 0x230   : > { %1456 = vmatmul.mubr.msk.f32.vlgmr.msra.gmra.mrb[4].mxu1 %vm300_vm1, %v646_v52 }
 0x231   : > { %v1560_v55 = vpop.eup %1559  ;;  %1461 = vmatmul.mubr.msk.f32.vlgmr.msra.gmra.mrb[6].mxu0 %vm300_vm1, %v647_v54  ;;  %1464 = vmatpush3.msra.mxu1 %v299_v53 }
 0x232   : > { %v648_v56 = vmul.f32 %v1560_v55, %v1552_v39  ;;  %1465 = vmatprep.mubr.msk.f32.mxu1 %vm1642_vm0, %v1641_v0  ;;  %1473 = vmatprep.subr.mxu1 %v1641_v0 }
 0x233   : > { %1470 = vmatprep.mubr.msk.f32.mxu0 %vm1642_vm0, %v1641_v0  ;;  %1469 = vmatpush3.msra.mxu0 %v1389_v58 }
 0x234   : > { %1466 = vmatmul.mubr.msk.f32.vlgmr.msra.gmra.mrb[6].mxu1 %vm300_vm1, %v648_v56  ;;  %1478 = vmatprep.subr.mxu0 %v1641_v0 }
 0x235   : > { %1475 = vmatprep.mubr.msk.f32.mxu1 %vm1642_vm0, %v1641_v0  ;;  %1474 = vmatpush3.msra.mxu1 %v941_v57 }
 0x236   : > { %1483 = vmatprep.subr.mxu1 %v1641_v0 }
 0x2ff   : > { %v718_v60 = vpop.f32.mrb[4].mxu0 }
 0x300   : > { %v1452_v61 = vpop.f32.mrb[5].mxu0  ;;  %1476 = vmatmul.mubr.msk.f32.vlgmr.msra.gmra.mrb[8].mxu1 %vm300_vm1, %v718_v60 }
 0x301   : > { %1484 = vmatpush3.msra.mxu1 %v1394_v59  ;;  %1485 = vmatprep.mubr.msk.f32.mxu1 %vm1642_vm0, %v1641_v0 }
 0x303   : > { %v791_v63 = vpop.f32.mrb[4].mxu1 }
 0x304   : > { %v864_v1 = vpop.f32.mrb[6].mxu0  ;;  %v1457_v2 = vpop.f32.mrb[5].mxu1  ;;  %1471 = vmatmul.mubr.msk.f32.vlgmr.msra.gmra.mrb[8].mxu0 %vm300_vm1, %v791_v63 }
 0x305   : > { %v1462_v3 = vpop.f32.mrb[7].mxu0  ;;  %1479 = vmatpush3.msra.mxu0 %v1392_v62  ;;  %1480 = vmatprep.mubr.msk.f32.mxu0 %vm1642_vm0, %v1641_v0 }
 0x307   : > { %v937_v4 = vpop.f32.mrb[6].mxu1 }
 0x308   : > { %v1467_v5 = vpop.f32.mrb[7].mxu1  ;;  %1481 = vmatmul.mubr.msk.f32.vlgmr.msra.gmra.mrb[10].mxu0 %vm300_vm1, %v864_v1  ;;  %1486 = vmatmul.mubr.msk.f32.vlgmr.msra.gmra.mrb[10].mxu1 %vm300_vm1, %v937_v4 }
 0x3d3   : > { %v1086_v6 = vpop.f32.mrb[8].mxu1 }
 0x3d4   : > { %v1477_v7 = vpop.f32.mrb[9].mxu1 }
 0x3d7   : > { %v1013_v8 = vpop.f32.mrb[8].mxu0 }
 0x3d8   : > { %v1087_v9 = vadd.f32 %v1086_v6, %v1013_v8  ;;  %v1472_v10 = vpop.f32.mrb[9].mxu0 }
 0x3db   : > { %v1161_v11 = vpop.f32.mrb[10].mxu0  ;;  %v1237_v12 = vpop.f32.mrb[10].mxu1 }
 0x3dc   : > { %v1165_v13 = vadd.f32 %v1161_v11, %v1087_v9  ;;  %v1482_v14 = vpop.f32.mrb[11].mxu0  ;;  %v1487_v0 = vpop.f32.mrb[11].mxu1 }
 0x3de   : > { %v1241_v16 = vadd.f32 %v1237_v12, %v1165_v13 }
 0x3e0   : > { %v1249_v17 = vadd.f32 %v1396_v15, %v1241_v16 }
 0x3e2   : > { %1251 = vst.msk [vmem:[%s269_s16] sm:$0xff] %vm1250_vm2, %v1249_v17 }
 0x3e3   : > { %1574 = shalt.err (!%p1571_p5)
}
 0x3e4   : > { %s1575_s10 = scalar_lea.hbm %s1825_s27, 128  ;;  %s1579_s13 = scalar_lea.hbm %s1877_s5, 256 }
 0x3e5   : > { %p1576_p6 = scmp.ne.s32.totalorder %s1825_s27, %s1575_s10  ;;  %p1580_p10 = scmp.lt.u32.totalorder %s1825_s27, %s1877_s5 }
 0x3e6   : > { %p1581_p11 = scmp.lt.u32.totalorder %s1579_s13, %s1575_s10  ;;  %p1583_p13 = scmp.lt.u32.totalorder %s1575_s10, %s1825_s27 }
 0x3e7   : > { %p1577_p7 = pnand %p1576_p6, %p1714_p4 }
 0x3e8   : > { %p1582_p12 = por %p1581_p11, %p1580_p10 }
 0x3e9   : > { %p1578_p9 = pneg %p1577_p7 }
 0x3ea   : > { %p1584_p0 = por %p1583_p13, %p1582_p12 }
 0x3ec   : > { %p1585_p1 = pnand %p1584_p0, %p1578_p9 }
 0x3ee   : > { %1588 = shalt.err (!%p1585_p1)
}
 0x3ef   : > { %1488 = dma.vmem_to_hbm [thread:$0]  (%p1714_p4), %s1827_s17, 128, %s1825_s27, %s1253_s29  }
 0x3f0 PF: > { %p1494_p2 = scmp.ge.s32.totalorder %s1639_s23, 2  ;;  %s1279_s16 = sand.u32 1, %s1619_s18  }
 0x3f1   : > { %s1280_s24 = scalar_lea.sflag [#allocation3], %s1279_s16 }
 0x3f2   : > { %p1491_p3 = pnand %p1494_p2, %p1721_p8 }
 0x3f4   : > { %1614 = dma.done.wait (!%p1491_p3), %s1280_s24, 128  }
 0x3f5   : > { %1616 = vsyncadd (!%p1491_p3), %s1280_s24, 4294967168  ;;  %s18_s23 = sadd.s32 1, %s1639_s23   ;;  %s1880_s18 = smov %s1623_s19 }
 0x3f6   : > { %p15_p5 = scmp.ge.s32.totalorder %s18_s23, 4   ;;  %s1881_s19 = smov %s1627_s20 }
 0x3f7   : > { %s1882_s20 = smov %s1727_s6  ;;  %s1883_s21 = smov %s1635_s22 }
 0x3f8   : > { %s1884_s22 = smov %s1886_s26  ;;  %17 = sbr.rel (!%p15_p5) target bundleno = 4 (0x4), region = 84 }
 0x3ff   :  { %1285 = vsyncpa [#allocation3], 1 }
 0x400   :  { %1287 = vsyncpa [#allocation3 + $0x1], 1 }

</bundles_post_ra>
